<compile_context>
chip_gen: v7x
topology: tpu7x:2x2x1
jax: 0.10.0
libtpu: 0.0.40
codegen_flags: <defaults>
</compile_context>

<pallas_src>
import math

import jax
import jax.numpy as jnp
from jax import lax
from jax.experimental import pallas as pl
from jax.experimental.pallas import tpu as pltpu

_MASK_BIAS = -1.0e30                      # finite large-negative bias (no -inf path)
_VMEM_SCOPED_DEFAULT = 32 * 1024 * 1024   # scoped-VMEM default on v6e/v7x


def _round_up(x, m):
    return (x + m - 1) // m * m


def _row_tile(n, target, align=16):
    """Row tiling for the linear kernel: (tile, padded_n).

    Full dim when small, else the largest aligned divisor <= target, else an
    aligned tile with padding (never falls back to one huge tile).
    """
    if n <= target:
        return n, n
    t = max(align, (target // align) * align)
    while t >= align:
        if n % t == 0:
            return t, n
        t -= align
    t = max(align, (target // align) * align)
    return t, _round_up(n, t)


def _col_tile(n, target, align=128):
    """Column tiling (divisor only; full dim if small or no aligned divisor)."""
    if n <= target:
        return n
    t = (target // align) * align
    while t >= align:
        if n % t == 0:
            return t
        t -= align
    return n


def _head_group(n_head, d_k):
    """Smallest divisor g of n_head with g*d_k a multiple of 128, else n_head."""
    for g in range(1, n_head + 1):
        if n_head % g == 0 and (g * d_k) % 128 == 0:
            return g
    return n_head


def _maybe_vmem_limit(estimate_bytes, headroom=4 * 1024 * 1024):
    """Only raise the scoped-VMEM limit when the tile budget actually needs it."""
    need = int(estimate_bytes) + headroom
    return need if need > _VMEM_SCOPED_DEFAULT else None


# ---------------------------------------------------------------------------
# Tiled linear:  y = x @ W + b   (in-kernel f32->bf16 cast, f32 accumulation)
# ---------------------------------------------------------------------------
def _linear_kernel(x_ref, w_ref, b_ref, o_ref):
    # Cast the activation tile to the weight dtype inside the kernel (VPU work
    # hidden under the MXU) instead of a separate XLA pass over HBM.
    x = x_ref[...].astype(w_ref.dtype)
    acc = jnp.dot(x, w_ref[...], preferred_element_type=jnp.float32)
    o_ref[...] = (acc + b_ref[...]).astype(o_ref.dtype)


def _linear(x, w, b, *, out_dtype, tm_target=512, tn_target=512):
    """x: (R, K) any float dtype, w: (K, N) bf16, b: (1, N) f32 -> (R, N)."""
    R, K = x.shape
    N = w.shape[1]
    x_item = x.dtype.itemsize
    w_item = w.dtype.itemsize
    o_item = jnp.dtype(out_dtype).itemsize

    # Keep single-buffer tiles within a sane budget even for very large K.
    tile_budget = 12 * 1024 * 1024
    tm_cap = max(16, (tile_budget // max(1, K * x_item)) // 16 * 16)
    tn_cap = max(128, (tile_budget // max(1, K * w_item)) // 128 * 128)

    TM, Rp = _row_tile(R, min(tm_target, tm_cap), 16)
    TN = _col_tile(N, min(tn_target, tn_cap), 128)
    if Rp != R:
        x = jnp.pad(x, ((0, Rp - R), (0, 0)))

    est_vmem = 2 * (TM * K * x_item + K * TN * w_item + TM * TN * o_item + TN * 4)
    bytes_acc = (Rp * K * x_item                      # x read once (resident over j)
                 + (Rp // TM) * K * N * w_item        # W re-streamed per row tile
                 + Rp * N * o_item)                   # output

    out = pl.pallas_call(
        _linear_kernel,
        out_shape=jax.ShapeDtypeStruct((Rp, N), out_dtype),
        grid_spec=pltpu.PrefetchScalarGridSpec(
            num_scalar_prefetch=0,
            grid=(Rp // TM, N // TN),
            in_specs=[
                pl.BlockSpec((TM, K), lambda i, j: (i, 0)),   # x row tile (resident over j)
                pl.BlockSpec((K, TN), lambda i, j: (0, j)),   # W column tile
                pl.BlockSpec((1, TN), lambda i, j: (0, j)),   # bias
            ],
            out_specs=pl.BlockSpec((TM, TN), lambda i, j: (i, j)),
        ),
        compiler_params=pltpu.CompilerParams(
            dimension_semantics=("parallel", "parallel"),
            vmem_limit_bytes=_maybe_vmem_limit(est_vmem)),
        cost_estimate=pl.CostEstimate(
            flops=2 * Rp * K * N, transcendentals=0,
            bytes_accessed=int(bytes_acc)),
    )(x, w, b)
    return out[:R] if Rp != R else out


# ---------------------------------------------------------------------------
# Flash attention over head groups, reading/writing (B, T, F)-layout tensors
# ---------------------------------------------------------------------------
def _make_flash_kernel(d_k, n_group, scale):
    def kernel(q_ref, k_ref, v_ref, keep_ref, o_ref, m_sc, l_sc, acc_sc):
        ki = pl.program_id(3)

        @pl.when(ki == 0)
        def _init():
            m_sc[...] = jnp.full(m_sc.shape, -jnp.inf, jnp.float32)
            l_sc[...] = jnp.zeros(l_sc.shape, jnp.float32)
            acc_sc[...] = jnp.zeros(acc_sc.shape, jnp.float32)

        keep = keep_ref[0]                       # (1, TK) or (TQ, TK), f32
        bias = (1.0 - keep) * _MASK_BIAS         # 0 where kept, -1e30 where masked

        for g in range(n_group):                 # unrolled; g is static
            lo, hi = g * d_k, (g + 1) * d_k
            q = q_ref[0, :, lo:hi]               # (TQ, d_k) bf16
            k = k_ref[0, :, lo:hi]               # (TK, d_k) bf16
            v = v_ref[0, :, lo:hi]               # (TK, d_k) bf16

            # Scores: contract the head dim of q and k directly (no transpose).
            s = lax.dot_general(q, k, (((1,), (1,)), ((), ())),
                                preferred_element_type=jnp.float32)   # (TQ, TK)
            s = s * scale + bias

            # Online softmax (f32).
            m_prev = m_sc[g]                                            # (TQ, 1)
            m_new = jnp.maximum(m_prev, jnp.max(s, axis=-1, keepdims=True))
            alpha = jnp.exp(m_prev - m_new)
            # `* keep` reproduces torch's post-softmax masked_fill(mask, 0.0)
            # (matters only for fully-masked rows -> zero context).
            p = jnp.exp(s - m_new) * keep
            l_sc[g] = alpha * l_sc[g] + jnp.sum(p, axis=-1, keepdims=True)
            acc_sc[g] = alpha * acc_sc[g] + lax.dot_general(
                p.astype(v.dtype), v, (((1,), (0,)), ((), ())),
                preferred_element_type=jnp.float32)
            m_sc[g] = m_new

        # TODO(synk): dropout on the attention weights is omitted
        # (inference / eval-mode semantics, p_attn == attn).

        @pl.when(ki == pl.num_programs(3) - 1)
        def _finalize():
            for g in range(n_group):
                lo, hi = g * d_k, (g + 1) * d_k
                l = l_sc[g]
                inv = jnp.where(l > 0.0, pl.reciprocal(l, approx=True), 0.0)
                o_ref[0, :, lo:hi] = (acc_sc[g] * inv).astype(o_ref.dtype)

    return kernel


def _flash_attention(q_arr, k_arr, v_arr, keep, *, n_head, d_k, n_group,
                     TQ, TK, T1p, T2p, n_feat, offsets, out_dtype):
    """q/k/v arrays in (B, T, width) layout; heads selected via feature offsets.

    Returns the concatenated multi-head context in (B, T1p, n_feat) layout.
    """
    B = q_arr.shape[0]
    GW = n_group * d_k
    HG = n_head // n_group
    q_off, k_off, v_off = offsets
    grid = (B, HG, T1p // TQ, T2p // TK)

    mask_rows = keep.shape[1]
    if mask_rows == 1:
        keep_spec = pl.BlockSpec((1, 1, TK), lambda b, h, qi, ki: (b, 0, ki))
        keep_rows_tile = 1
    else:
        keep_spec = pl.BlockSpec((1, TQ, TK), lambda b, h, qi, ki: (b, qi, ki))
        keep_rows_tile = TQ

    o_item = jnp.dtype(out_dtype).itemsize
    est_vmem = (2 * ((TQ * GW + 2 * TK * GW) * 2
                     + TQ * GW * o_item
                     + keep_rows_tile * TK * 4)
                + n_group * TQ * (128 + 128 + max(d_k, 128)) * 4   # scratch (lane-padded)
                + 2 * TQ * TK * 4)                                  # score tile headroom
    bytes_acc = (B * T1p * n_feat * 2                               # q (resident over ki)
                 + 2 * B * T2p * n_feat * 2 * max(1, T1p // TQ)     # k, v re-streamed
                 + B * T1p * n_feat * o_item
                 + keep.size * 4)

    return pl.pallas_call(
        _make_flash_kernel(d_k, n_group, 1.0 / math.sqrt(d_k)),
        out_shape=jax.ShapeDtypeStruct((B, T1p, n_feat), out_dtype),
        grid_spec=pltpu.PrefetchScalarGridSpec(
            num_scalar_prefetch=0,
            grid=grid,
            in_specs=[
                pl.BlockSpec((1, TQ, GW), lambda b, h, qi, ki: (b, qi, q_off + h)),
                pl.BlockSpec((1, TK, GW), lambda b, h, qi, ki: (b, ki, k_off + h)),
                pl.BlockSpec((1, TK, GW), lambda b, h, qi, ki: (b, ki, v_off + h)),
                keep_spec,
            ],
            out_specs=pl.BlockSpec((1, TQ, GW), lambda b, h, qi, ki: (b, qi, h)),
            scratch_shapes=[
                pltpu.VMEM((n_group, TQ, 1), jnp.float32),     # running max m
                pltpu.VMEM((n_group, TQ, 1), jnp.float32),     # running sum l
                pltpu.VMEM((n_group, TQ, d_k), jnp.float32),   # running context
            ],
        ),
        compiler_params=pltpu.CompilerParams(
            dimension_semantics=("parallel", "parallel", "parallel", "arbitrary"),
            vmem_limit_bytes=_maybe_vmem_limit(est_vmem)),
        cost_estimate=pl.CostEstimate(
            flops=int(4 * B * n_head * T1p * T2p * d_k),
            transcendentals=int(B * n_head * T1p * T2p),
            bytes_accessed=int(bytes_acc)),
    )(q_arr, k_arr, v_arr, keep)


# ---------------------------------------------------------------------------
# Full module forward
# ---------------------------------------------------------------------------
def multi_headed_attention(query, key, value, mask, prepared, *, n_head,
                           tq_target=256, tk_target=512):
    """query: (B, T1, F); key/value: (B, T2, F); mask: (B,1,T2) or (B,T1,T2), 0 = masked."""
    fused = (query is key) and (key is value)
    B, T1, F = query.shape
    T2 = key.shape[1]
    assert F % n_head == 0
    d_k = F // n_head
    G = _head_group(n_head, d_k)
    GW = G * d_k

    out_dtype = query.dtype
    cdt = prepared["wq"].dtype    # bf16 compute dtype for MXU inputs

    # ---- sequence tiles / padded lengths ----------------------------------
    if fused:
        if T1 <= tq_target:
            TQ = TK = T1
            T1p = T2p = T1
        else:
            T1p = T2p = _round_up(T1, tq_target)
            TQ = tq_target
            TK = tk_target if T1p % tk_target == 0 else tq_target
    else:
        if T1 <= tq_target:
            TQ, T1p = T1, T1
        else:
            TQ, T1p = tq_target, _round_up(T1, tq_target)
        if T2 <= tk_target:
            TK, T2p = T2, T2
        else:
            TK, T2p = tk_target, _round_up(T2, tk_target)

    # ---- keep mask (1 = keep, 0 = masked), matching torch mask.eq(0) -------
    if mask is None:
        keep = jnp.ones((B, 1, T2), jnp.float32)
    else:
        keep = (mask != 0).astype(jnp.float32)

    # ---- pad to tile multiples (padded keys masked, padded queries sliced) -
    if T1p != T1:
        query = jnp.pad(query, ((0, 0), (0, T1p - T1), (0, 0)))
    if fused:
        key = value = query
    elif T2p != T2:
        key = jnp.pad(key, ((0, 0), (0, T2p - T2), (0, 0)))
        value = jnp.pad(value, ((0, 0), (0, T2p - T2), (0, 0)))
    if keep.shape[1] != 1 and T1p != T1:
        keep = jnp.pad(keep, ((0, 0), (0, T1p - T1), (0, 0)))
    if T2p != T2:
        keep = jnp.pad(keep, ((0, 0), (0, 0), (0, T2p - T2)))

    # ---- projections (f32 activations cast in-kernel; bf16 weights) --------
    if fused:
        qkv = _linear(query.reshape(B * T1p, F), prepared["w_qkv"],
                      prepared["b_qkv"], out_dtype=cdt)            # (B*T1p, 3F)
        if GW % 128 == 0:
            # Zero-copy: the flash kernel indexes Q/K/V out of the fused array.
            qkv = qkv.reshape(B, T1p, 3 * F)
            q_arr = k_arr = v_arr = qkv
            nb = F // GW
            offsets = (0, nb, 2 * nb)
        else:
            # Small / odd feature widths: split once (block-width rule needs it).
            q_arr = qkv[:, 0 * F:1 * F].reshape(B, T1p, F)
            k_arr = qkv[:, 1 * F:2 * F].reshape(B, T1p, F)
            v_arr = qkv[:, 2 * F:3 * F].reshape(B, T1p, F)
            offsets = (0, 0, 0)
    else:
        q_arr = _linear(query.reshape(B * T1p, F), prepared["wq"], prepared["bq"],
                        out_dtype=cdt).reshape(B, T1p, F)
        k_arr = _linear(key.reshape(B * T2p, F), prepared["wk"], prepared["bk"],
                        out_dtype=cdt).reshape(B, T2p, F)
        v_arr = _linear(value.reshape(B * T2p, F), prepared["wv"], prepared["bv"],
                        out_dtype=cdt).reshape(B, T2p, F)
        offsets = (0, 0, 0)

    # ---- flash attention (writes (B, T1p, F) context directly) -------------
    ctx = _flash_attention(q_arr, k_arr, v_arr, keep,
                           n_head=n_head, d_k=d_k, n_group=G,
                           TQ=TQ, TK=TK, T1p=T1p, T2p=T2p, n_feat=F,
                           offsets=offsets, out_dtype=cdt)

    # ---- output projection --------------------------------------------------
    out = _linear(ctx.reshape(B * T1p, F), prepared["wo"], prepared["bo"],
                  out_dtype=out_dtype).reshape(B, T1p, F)
    if T1p != T1:
        out = out[:, :T1, :]
    return out


# ---------------------------------------------------------------------------
# Parameters (torch Linear weights stored as (in, out) = torch_weight.T)
# ---------------------------------------------------------------------------
def init_params(key, n_feat):
    ks = jax.random.split(key, 8)
    bound = 1.0 / math.sqrt(n_feat)

    def lin(kw, kb):
        w = jax.random.uniform(kw, (n_feat, n_feat), jnp.float32, -bound, bound)
        b = jax.random.uniform(kb, (1, n_feat), jnp.float32, -bound, bound)
        return w, b

    wq, bq = lin(ks[0], ks[1])
    wk, bk = lin(ks[2], ks[3])
    wv, bv = lin(ks[4], ks[5])
    wo, bo = lin(ks[6], ks[7])
    return (wq, bq, wk, bk, wv, bv, wo, bo)


def prepare_params(params, mxu_dtype=jnp.bfloat16):
    """Pre-cast weights to the MXU dtype once and build the fused QKV weight."""
    wq, bq, wk, bk, wv, bv, wo, bo = params
    d = mxu_dtype
    return {
        "wq": wq.astype(d), "bq": bq.astype(jnp.float32),
        "wk": wk.astype(d), "bk": bk.astype(jnp.float32),
        "wv": wv.astype(d), "bv": bv.astype(jnp.float32),
        "wo": wo.astype(d), "bo": bo.astype(jnp.float32),
        "w_qkv": jnp.concatenate([wq, wk, wv], axis=1).astype(d),
        "b_qkv": jnp.concatenate([bq, bk, bv], axis=1).astype(jnp.float32),
    }


def reference_mha(query, key, value, mask, params, *, n_head):
    """Pure-JAX f32 reference mirroring the PyTorch forward (eval mode)."""
    wq, bq, wk, bk, wv, bv, wo, bo = params
    B, T1, F = query.shape
    d_k = F // n_head

    def split_heads(x):
        return x.reshape(B, -1, n_head, d_k).transpose(0, 2, 1, 3)

    q = split_heads(query @ wq + bq)
    k = split_heads(key @ wk + bk)
    v = split_heads(value @ wv + bv)

    scores = jnp.einsum("bhqd,bhkd->bhqk", q, k) / math.sqrt(d_k)
    m = (mask[:, None, :, :] == 0.0)
    scores = jnp.where(m, jnp.finfo(scores.dtype).min, scores)
    attn = jax.nn.softmax(scores, axis=-1)
    attn = jnp.where(m, 0.0, attn)
    x = jnp.einsum("bhqk,bhkd->bhqd", attn, v)
    x = x.transpose(0, 2, 1, 3).reshape(B, T1, F)
    return x @ wo + bo


if __name__ == "__main__":
    # ---------------- Config A: tiny shapes, general + fused paths ----------
    B, T, F, H = 2, 8, 32, 4
    key = jax.random.PRNGKey(0)
    kq, kk, kv, kp, kb = jax.random.split(key, 5)

    query = jax.random.normal(kq, (B, T, F), jnp.float32)
    keyt = jax.random.normal(kk, (B, T, F), jnp.float32)
    value = jax.random.normal(kv, (B, T, F), jnp.float32)
    mask = jnp.ones((B, 1, T), jnp.float32).at[1, 0, -2:].set(0.0)

    params = init_params(kp, F)
    prepared = prepare_params(params)

    # General (cross-attention style) path: distinct q/k/v tensors.
    out = multi_headed_attention(query, keyt, value, mask, prepared, n_head=H)
    out = jax.block_until_ready(out)
    ref = reference_mha(query, keyt, value, mask, params, n_head=H)
    assert out.shape == (B, T, F)
    assert jnp.allclose(out, ref, atol=3e-2, rtol=3e-2), "general path mismatch"

    # Fused self-attention path: query is key is value -> single QKV matmul.
    out_sa = multi_headed_attention(query, query, query, mask, prepared, n_head=H)
    out_sa = jax.block_until_ready(out_sa)
    ref_sa = reference_mha(query, query, query, mask, params, n_head=H)
    assert jnp.allclose(out_sa, ref_sa, atol=3e-2, rtol=3e-2), "fused path mismatch"

    # ------- Config B: head grouping (d_k=64), query padding, (B,T1,T2) mask
    B2, T1b, T2b, F2, H2 = 1, 300, 160, 256, 4
    k2 = jax.random.split(jax.random.PRNGKey(1), 5)
    q2 = jax.random.normal(k2[0], (B2, T1b, F2), jnp.float32)
    kt2 = jax.random.normal(k2[1], (B2, T2b, F2), jnp.float32)
    v2 = jax.random.normal(k2[2], (B2, T2b, F2), jnp.float32)
    mask2 = jax.random.bernoulli(k2[3], 0.85, (B2, T1b, T2b)).astype(jnp.float32)
    params2 = init_params(k2[4], F2)
    prepared2 = prepare_params(params2)

    out2 = multi_headed_attention(q2, kt2, v2, mask2, prepared2, n_head=H2)
    out2 = jax.block_until_ready(out2)
    ref2 = reference_mha(q2, kt2, v2, mask2, params2, n_head=H2)
    assert out2.shape == (B2, T1b, F2)
    # bf16 MXU inputs with f32 accumulation -> relaxed tolerance vs f32 reference.
    assert jnp.allclose(out2, ref2, atol=5e-2, rtol=5e-2), "config B mismatch"

    print("KERNEL_OK")
</pallas_src>

<mosaic_0001>
module attributes {stable_mosaic.version = 11 : i64} {
  func.func @_linear_kernel(%arg0: i32, %arg1: i32, %arg2: memref<16x32xf32, #tpu.memory_space<vmem>>, %arg3: memref<32x32xbf16, #tpu.memory_space<vmem>>, %arg4: memref<1x32xf32, #tpu.memory_space<vmem>>, %arg5: memref<16x32xbf16, #tpu.memory_space<vmem>>) attributes {dimension_semantics = [#tpu.dimension_semantics<parallel>, #tpu.dimension_semantics<parallel>], iteration_bounds = array<i64: 1, 1>, scalar_prefetch = 0 : i64, scratch_operands = 0 : i64, tpu.core_type = #tpu.core_type<tc>, window_params = [{transform_indices = @transform_0, window_bounds = array<i64: 16, 32>}, {transform_indices = @transform_1, window_bounds = array<i64: 32, 32>}, {transform_indices = @transform_2, window_bounds = array<i64: 1, 32>}, {transform_indices = @transform_3, window_bounds = array<i64: 16, 32>}]} {
    %c0 = arith.constant 0 : index
    %c0_0 = arith.constant 0 : index
    %0 = vector.load %arg2[%c0, %c0_0] : memref<16x32xf32, #tpu.memory_space<vmem>>, vector<16x32xf32>
    %1 = arith.truncf %0 : vector<16x32xf32> to vector<16x32xbf16>
    %c0_1 = arith.constant 0 : index
    %c0_2 = arith.constant 0 : index
    %2 = vector.load %arg3[%c0_1, %c0_2] : memref<32x32xbf16, #tpu.memory_space<vmem>>, vector<32x32xbf16>
    %cst = arith.constant dense<0.000000e+00> : vector<16x32xf32>
    %3 = tpu.matmul %1, %2, %cst {dimension_numbers = #tpu.dot_dimension_numbers<[1], [0], [0], [1], [0, 0, 1, 1], [], []>} : vector<16x32xbf16>, vector<32x32xbf16>, vector<16x32xf32> -> vector<16x32xf32>
    %c0_3 = arith.constant 0 : index
    %c0_4 = arith.constant 0 : index
    %4 = vector.load %arg4[%c0_3, %c0_4] : memref<1x32xf32, #tpu.memory_space<vmem>>, vector<1x32xf32>
    %5 = vector.broadcast %4 : vector<1x32xf32> to vector<16x32xf32>
    %6 = arith.addf %3, %5 : vector<16x32xf32>
    %7 = arith.truncf %6 : vector<16x32xf32> to vector<16x32xbf16>
    %c0_5 = arith.constant 0 : index
    %c0_6 = arith.constant 0 : index
    %8 = vector.load %arg5[%c0_5, %c0_6] : memref<16x32xbf16, #tpu.memory_space<vmem>>, vector<16x32xbf16>
    tpu.vector_store %arg5[%c0_5, %c0_6], %7 {strides = array<i32>} : memref<16x32xbf16, #tpu.memory_space<vmem>>, vector<16x32xbf16>,
    return
  }
  func.func @transform_0(%arg0: i32, %arg1: i32) -> (i32, i32) {
    %c0_i32 = arith.constant 0 : i32
    %c0_i32_0 = arith.constant 0 : i32
    return %arg0, %c0_i32 : i32, i32
  }
  func.func @transform_1(%arg0: i32, %arg1: i32) -> (i32, i32) {
    %c0_i32 = arith.constant 0 : i32
    %c0_i32_0 = arith.constant 0 : i32
    return %c0_i32, %arg1 : i32, i32
  }
  func.func @transform_2(%arg0: i32, %arg1: i32) -> (i32, i32) {
    %c0_i32 = arith.constant 0 : i32
    %c0_i32_0 = arith.constant 0 : i32
    return %c0_i32, %arg1 : i32, i32
  }
  func.func @transform_3(%arg0: i32, %arg1: i32) -> (i32, i32) {
    %c0_i32 = arith.constant 0 : i32
    return %arg0, %arg1 : i32, i32
  }
}

</mosaic_0001>

<bundles_post_ra>
// kernel: tpu_custom_call.1
= control target key start
LH: loop header
LB: loop body
LE: loop exit
PB: predicated region body
PF: predicated region fallthrough
CT: control target
= control target key end

     0   :  { %8 = vsyncpa [#allocation3], 0  ;;  %s320_s0 = inlined_call_operand.hbm [shape: f32[16,32], index: 0, kind: input, shape index: {}]   ;;  %s321_s1 = inlined_call_operand.hbm [shape: bf16[32,32], index: 1, kind: input, shape index: {}]   ;;  %s322_s2 = inlined_call_operand.vmem [shape: f32[1,32], index: 2, kind: input, shape index: {}]   ;;  %s323_s3 = inlined_call_operand.hbm [shape: bf16[16,32], index: 3, kind: output, shape index: {}]  }
   0x1   :  { %9 = vsyncpa [#allocation6], 0 }
   0x2   :  { %10 = vsyncpa [#allocation4], 0  ;;  %s246_s12 = smov [#allocation2]   ;;  %s174_s16 = scalar_lea.hbm %s320_s0, 256 }
   0x3   :  { %s16_s13 = sshll.u32 %s246_s12, 4  ;;  %p175_p0 = scmp.ne.s32.totalorder %s320_s0, %s174_s16  ;;  %s17_s13 = int_to_ptr.vmem [resolvable:$true] %s16_s13 }
   0x4   :  { %p178_p1 = scmp.lt.u32.totalorder %s174_s16, %s320_s0 }
   0x6   :  { %p180_p2 = pnand %p178_p1, %p175_p0 }
   0x8   :  { %183 = shalt.err (!%p180_p2)
}
   0x9   :  { %s184_s21 = scalar_lea.vmem %s17_s13, 256  ;;  %p189_p4 = scmp.lt.s32.totalorder %s17_s13, %s17_s13 }
   0xa   :  { %p185_p3 = scmp.ne.s32.totalorder %s17_s13, %s184_s21  ;;  %p190_p5 = scmp.lt.s32.totalorder %s184_s21, %s184_s21 }
   0xc   :  { %p191_p6 = por %p190_p5, %p189_p4 }
   0xe   :  { %p192_p7 = pnand %p191_p6, %p185_p3 }
  0x10   :  { %195 = shalt.err (!%p192_p7)
}
  0x11   :  { %s247_s22 = smov 128   ;;  %s248_s23 = smov 8  }
  0x12   :  { %22 = dma.hbm_to_vmem [thread:$0]  %s320_s0, 256, %s17_s13, [#allocation3], %s247_s22, %s247_s22, %s248_s23  }
  0x13   :  { %s249_s26 = smov [#allocation5]   ;;  %s196_s30 = scalar_lea.hbm %s321_s1, 256 }
  0x14   :  { %s28_s27 = sshll.u32 %s249_s26, 4  ;;  %p197_p8 = scmp.ne.s32.totalorder %s321_s1, %s196_s30  ;;  %s29_s27 = int_to_ptr.vmem [resolvable:$true] %s28_s27 }
  0x15   :  { %p200_p9 = scmp.lt.u32.totalorder %s196_s30, %s321_s1 }
  0x17   :  { %p202_p10 = pnand %p200_p9, %p197_p8 }
  0x19   :  { %205 = shalt.err (!%p202_p10)
}
  0x1a   :  { %s206_s8 = scalar_lea.vmem %s29_s27, 256  ;;  %p211_p12 = scmp.lt.s32.totalorder %s29_s27, %s29_s27 }
  0x1b   :  { %p207_p11 = scmp.ne.s32.totalorder %s29_s27, %s206_s8  ;;  %p212_p13 = scmp.lt.s32.totalorder %s206_s8, %s206_s8 }
  0x1d   :  { %p213_p0 = por %p212_p13, %p211_p12 }
  0x1f   :  { %p214_p1 = pnand %p213_p0, %p207_p11 }
  0x21   :  { %217 = shalt.err (!%p214_p1)
}
  0x22   :  { %s250_s0 = smov 64   ;;  %s251_s9 = smov 4  }
  0x23   :  { %34 = dma.hbm_to_vmem [thread:$0]  %s321_s1, 256, %s29_s27, [#allocation6], %s250_s0, %s250_s0, %s251_s9  }
  0x24   :  { %240 = dma.done.wait [#allocation3], 256  }
  0x25   :  { %241 = vsyncadd [#allocation3], 4294967040 }
  0x26   :  { %242 = dma.done.wait [#allocation6], 256  }
  0x27   :  { %243 = vsyncadd [#allocation6], 4294967040  ;;  %v252_v0 = vmov 0.0   ;;  %vm253_vm0 = vmmov 0   ;;  %v172_v1 = vld [vmem:[#allocation5] sm:$0xff]   ;;  %v173_v2 = vld [vmem:[#allocation5 + $0x8] sm:$0xff]  }
  0x28   :  { %155 = vmatprep.subr.bf16.mxu0 %v252_v0  ;;  %159 = vmatprep.mubr.msk.bf16.mxu0 %vm253_vm0, %v252_v0  ;;  %v44_v3 = vld [vmem:[#allocation2] sm:$0xff]  ;;  %v45_v4 = vld [vmem:[#allocation2 + $0x8] sm:$0xff]  ;;  %vm70_vm1 = vcmask 261120   ;;  %vm123_vm2 = vcmask 257024   ;;  %s254_s13 = smov [#allocation7]  }
  0x29   :  { %156 = vmatpush3.bf16.msra.mxu0 %v172_v1  ;;  %v46_v5 = vpack.c.bf16 %v45_v4, %v44_v3  ;;  %v144_v6 = vld [vmem:[%s322_s2] ss:$0 sm:$0xff]  ;;  %s131_s14 = sshll.u32 %s254_s13, 4  ;;  %s132_s14 = int_to_ptr.vmem [resolvable:$true] %s131_s14 }
  0x2a   :  { %157 = vmatprep.subr.bf16.mxu0 %v252_v0  ;;  %s218_s15 = scalar_lea.vmem %s132_s14, 128  ;;  %p223_p3 = scmp.lt.s32.totalorder %s132_s14, %s132_s14 }
  0x2b   :  { %p219_p2 = scmp.ne.s32.totalorder %s132_s14, %s218_s15  ;;  %p224_p4 = scmp.lt.s32.totalorder %s218_s15, %s218_s15 }
  0x2d   :  { %158 = vmatpush3.bf16.msra.mxu0 %v173_v2  ;;  %p225_p5 = por %p224_p4, %p223_p3 }
  0x2f   :  { %p226_p6 = pnand %p225_p5, %p219_p2 }
  0x30   :  { %160 = vmatmul.mubr.msk.bf16.vlgmr.msra.gmra.mrb[0].mxu0 %vm70_vm1, %v46_v5 }
 0x103   :  { %v108_v7 = vpop.f32.mrb[0].mxu0 }
 0x104   :  { %v109_v8 = vadd.f32 %v144_v6, %v108_v7  ;;  %v161_v9 = vpop.f32.mrb[1].mxu0 }
 0x105   :  { %v111_v10 = vpop.f32.mrb[2].mxu0 }
 0x106   :  { %v150_v11 = vpack.c.bf16 %v109_v8, %v109_v8  ;;  %v112_v12 = vadd.f32 %v144_v6, %v111_v10  ;;  %v162_v13 = vpop.f32.mrb[3].mxu0 }
 0x108   :  { %v151_v14 = vpack.c.bf16 %v112_v12, %v112_v12  ;;  %124 = vst.msk [vmem:[#allocation7] sm:$0xf] %vm123_vm2, %v150_v11 }
 0x10a   :  { %125 = vst.msk [vmem:[#allocation7 + $0x4] sm:$0xf] %vm123_vm2, %v151_v14 }
 0x10b   :  { %229 = shalt.err (!%p226_p6)
}
 0x10c   :  { %s230_s17 = scalar_lea.hbm %s323_s3, 128 }
 0x10d   :  { %p231_p7 = scmp.ne.s32.totalorder %s323_s3, %s230_s17  ;;  %p234_p8 = scmp.lt.u32.totalorder %s230_s17, %s323_s3 }
 0x10f   :  { %p236_p9 = pnand %p234_p8, %p231_p7 }
 0x111   :  { %239 = shalt.err (!%p236_p9)
}
 0x112   :  { %137 = dma.vmem_to_hbm [thread:$0]  %s132_s14, 128, %s323_s3, [#allocation4], %s250_s0, %s250_s0, %s251_s9  }
 0x113   :  { %244 = dma.done.wait [#allocation4], 128  }
 0x114   :  { %245 = vsyncadd [#allocation4], 4294967168 }
 0x115   :  { %141 = vsyncpa [#allocation3], 1 }
 0x116   :  { %142 = vsyncpa [#allocation6], 1 }
 0x117   :  { %143 = vsyncpa [#allocation4], 1 }

</bundles_post_ra>
